<compile_context>
chip_gen: v7x
topology: tpu7x:2x2x1
jax: 0.10.0
libtpu: 0.0.40
codegen_flags: <defaults>
</compile_context>

<pallas_src>
import math

import jax
import jax.numpy as jnp
from jax.experimental import pallas as pl
from jax.experimental.pallas import tpu as pltpu

_SUBLANE = 8                 # f32 sublane tiling unit
_PALLAS_MIN_FLOPS = 2 << 20  # below this, plain XLA fusion beats the pallas_call


def _round_up(x: int, m: int) -> int:
    return ((x + m - 1) // m) * m


# ----------------------------------------------------------------------------
# Kernel: one batch tile of  relu(x @ W1 + b1) @ W2 + b2
# ----------------------------------------------------------------------------
def _mlp_kernel(x_ref, w1_ref, b1_ref, w2_ref, b2_ref, o_ref):
    x = x_ref[...].astype(w1_ref.dtype)          # in-kernel cast (free, hidden by MXU/DMA)
    h = jnp.dot(x, w1_ref[...], preferred_element_type=jnp.float32)
    h = jnp.maximum(h + b1_ref[...], 0.0)        # bias + ReLU in f32 (v5e VPU has no bf16)
    y = jnp.dot(h.astype(w2_ref.dtype), w2_ref[...],
                preferred_element_type=jnp.float32)
    o_ref[...] = (y + b2_ref[...]).astype(o_ref.dtype)


# ----------------------------------------------------------------------------
# Parameter preparation (done ONCE, not per forward call)
# ----------------------------------------------------------------------------
def prepare_params(w1, b1, w2, b2, compute_dtype=jnp.bfloat16):
    """Cast weights to the MXU compute dtype and reshape biases to (1, D) f32.

    Hoisted out of the per-call path so each forward does not pay an HBM
    write+read pass just to re-cast the (reused) weights.
    """
    hidden = w1.shape[1]
    out_dim = w2.shape[1]
    w1c = w1.astype(compute_dtype)
    w2c = w2.astype(compute_dtype)
    b1r = b1.astype(jnp.float32).reshape(1, hidden)
    b2r = b2.astype(jnp.float32).reshape(1, out_dim)
    return (w1c, b1r, w2c, b2r)


def _plain_forward(x, w1c, b1r, w2c, b2r, out_dtype):
    """Plain-XLA path (used for tiny problems where kernel launch overhead wins)."""
    h = jnp.maximum(
        jnp.dot(x.astype(w1c.dtype), w1c, preferred_element_type=jnp.float32) + b1r, 0.0)
    y = jnp.dot(h.astype(w2c.dtype), w2c, preferred_element_type=jnp.float32) + b2r
    return y.astype(out_dtype)


# ----------------------------------------------------------------------------
# Batch-tile selection
# ----------------------------------------------------------------------------
def _pick_batch_tile(n, *, bytes_per_row, vmem_headroom, max_tile=1024):
    """Target up to ~1024 rows (amortizes the ~0.35us/step pipeline overhead),
    bounded by VMEM headroom, but shrink so the grid has >= 4 steps when the
    batch allows (>= 2 steps per TensorCore on v7x -> overlap + core sharding)."""
    n8 = _round_up(max(n, 1), _SUBLANE)
    cap = max(_SUBLANE,
              (vmem_headroom // max(bytes_per_row, 1)) // _SUBLANE * _SUBLANE)
    tile = min(max_tile, cap, n8)
    if n8 >= 4 * _SUBLANE:
        tile = min(tile, _round_up((n8 + 3) // 4, _SUBLANE))
    elif n8 >= 2 * _SUBLANE:
        tile = min(tile, _round_up((n8 + 1) // 2, _SUBLANE))
    return max(_SUBLANE, tile)


# ----------------------------------------------------------------------------
# pallas_call wrapper
# ----------------------------------------------------------------------------
def _weight_spec(shape, single_buffer):
    if single_buffer:
        # Grid-invariant operand -> single VMEM buffer (no double buffering).
        return pl.BlockSpec(shape, lambda i: (0, 0), pipeline_mode=pl.Buffered(1))
    return pl.BlockSpec(shape, lambda i: (0, 0))


def _run_pallas(xb, w1c, b1r, w2c, b2r, *, batch_tile, n_pad, out_dtype,
                vmem_limit, cost, single_buffer_weights):
    in_dim = xb.shape[1]
    hidden = w1c.shape[1]
    out_dim = w2c.shape[1]
    grid = (n_pad // batch_tile,)

    return pl.pallas_call(
        _mlp_kernel,
        out_shape=jax.ShapeDtypeStruct((n_pad, out_dim), out_dtype),
        grid_spec=pltpu.PrefetchScalarGridSpec(
            num_scalar_prefetch=0,
            grid=grid,
            in_specs=[
                # Streamed batch tile of x; last dim == full in_dim (no 128 pad).
                pl.BlockSpec((batch_tile, in_dim), lambda i: (i, 0)),
                _weight_spec((in_dim, hidden), single_buffer_weights),   # W1 (resident)
                _weight_spec((1, hidden), single_buffer_weights),        # b1 (resident)
                _weight_spec((hidden, out_dim), single_buffer_weights),  # W2 (resident)
                _weight_spec((1, out_dim), single_buffer_weights),       # b2 (resident)
            ],
            # Output emitted in out_dtype with last dim == full out_dim: minimal
            # HBM writeback (masked vst is cheaper than 8x the bytes here).
            out_specs=pl.BlockSpec((batch_tile, out_dim), lambda i: (i, 0)),
        ),
        compiler_params=pltpu.CompilerParams(
            dimension_semantics=("parallel",),   # batch axis shards across TCs on v7x
            vmem_limit_bytes=vmem_limit),
        cost_estimate=cost,
    )(xb, w1c, b1r, w2c, b2r)


def cognitive_observer_forward(x, params, *, batch_tile=None, force_pallas=None):
    """Pallas implementation of CognitiveObserver.forward (the encoder MLP).

    x      : (N, in_dim) float
    params : output of prepare_params(w1, b1, w2, b2, compute_dtype)
             (w1 is the transpose of the torch Linear weight, i.e. (in, hidden))
    returns (N, out_dim) in x.dtype, == relu(x @ W1 + b1) @ W2 + b2
    Note: with the default bf16 compute dtype, results match the f32 PyTorch
    module only to ~1e-2 relative; use compute_dtype=float32 for exactness.
    """
    w1c, b1r, w2c, b2r = params
    N, in_dim = x.shape
    hidden = w1c.shape[1]
    out_dim = w2c.shape[1]
    out_dtype = x.dtype

    flops = 2 * N * (in_dim * hidden + hidden * out_dim)
    use_pallas = (flops >= _PALLAS_MIN_FLOPS) if force_pallas is None else force_pallas
    if not use_pallas:
        return _plain_forward(x, w1c, b1r, w2c, b2r, out_dtype)

    w_bpe = jnp.dtype(w1c.dtype).itemsize
    x_bpe = jnp.dtype(x.dtype).itemsize
    o_bpe = jnp.dtype(out_dtype).itemsize

    # Resident (single-buffered) weights + per-row streamed/intermediate bytes.
    resident = (in_dim * hidden + hidden * out_dim) * w_bpe + (hidden + out_dim) * 4
    bytes_per_row = (2 * (in_dim * x_bpe + out_dim * o_bpe)   # 2x-buffered x / out tiles
                     + hidden * 4 + out_dim * 4               # f32 intermediates
                     + in_dim * w_bpe)                        # in-kernel cast of x

    try:
        vmem_cap = int(pltpu.get_tpu_info().vmem_capacity_bytes)
    except Exception:
        vmem_cap = 64 << 20   # v7x per-TC capacity: the safe minimum across gens

    if batch_tile is None:
        headroom = max(8 << 20, vmem_cap // 2 - resident)
        batch_tile = _pick_batch_tile(N, bytes_per_row=bytes_per_row,
                                      vmem_headroom=headroom)
    batch_tile = max(_SUBLANE, _round_up(batch_tile, _SUBLANE))
    n_pad = _round_up(max(N, 1), batch_tile)

    # Batch-only padding (cheap row pad; no feature-dim pad, no dtype cast here).
    # NOTE: padded rows produce relu(b1) @ W2 + b2 in y_pad; they are sliced off
    # below and must never be read by any future fused consumer.
    xb = x if n_pad == N else jnp.pad(x, ((0, n_pad - N), (0, 0)))

    streamed = batch_tile * bytes_per_row
    needed = resident + streamed
    vmem_limit = int(min(max(2 * needed, 16 << 20), vmem_cap - (4 << 20)))
    vmem_limit = max(vmem_limit, min(needed + (2 << 20), vmem_cap))
    # TODO(synk): if `resident` itself ever exceeds the budget (multi-thousand-wide
    # layers), tile hidden/out with an extra "arbitrary" grid axis instead of
    # keeping the weights fully VMEM-resident.

    cost = pl.CostEstimate(
        flops=2 * n_pad * (in_dim * hidden + hidden * out_dim),
        transcendentals=0,
        bytes_accessed=(xb.size * x_bpe + (w1c.size + w2c.size) * w_bpe
                        + (b1r.size + b2r.size) * 4 + n_pad * out_dim * o_bpe),
    )

    common = dict(batch_tile=batch_tile, n_pad=n_pad, out_dtype=out_dtype,
                  vmem_limit=vmem_limit, cost=cost)
    try:
        y_pad = _run_pallas(xb, w1c, b1r, w2c, b2r,
                            single_buffer_weights=True, **common)
    except Exception:
        # pipeline_mode=pl.Buffered(1) unsupported on this jax/libtpu build:
        # fall back to default double-buffered resident weights (still correct).
        y_pad = _run_pallas(xb, w1c, b1r, w2c, b2r,
                            single_buffer_weights=False, **common)

    return y_pad if n_pad == N else y_pad[:N]


# ----------------------------------------------------------------------------
# Reference + init
# ----------------------------------------------------------------------------
def reference_forward(x, w1, b1, w2, b2):
    """Plain-JAX f32 reference (semantics of the PyTorch encoder)."""
    return jnp.maximum(x @ w1 + b1, 0.0) @ w2 + b2


def init_params(key, in_dim, hidden_dim, out_dim):
    """Deterministic PyTorch-style (uniform +-1/sqrt(fan_in)) init for the two Linears."""
    k1, k2, k3, k4 = jax.random.split(key, 4)
    bound1 = 1.0 / math.sqrt(in_dim)
    bound2 = 1.0 / math.sqrt(hidden_dim)
    w1 = jax.random.uniform(k1, (in_dim, hidden_dim), jnp.float32, -bound1, bound1)
    b1 = jax.random.uniform(k2, (hidden_dim,), jnp.float32, -bound1, bound1)
    w2 = jax.random.uniform(k3, (hidden_dim, out_dim), jnp.float32, -bound2, bound2)
    b2 = jax.random.uniform(k4, (out_dim,), jnp.float32, -bound2, bound2)
    return w1, b1, w2, b2


if __name__ == "__main__":
    # Small shapes consistent with the module; batch is ragged (not a multiple of
    # the batch tile) to exercise the row-padding path, and the tile picker gives
    # a 4-step grid (pipelining / dual-TC sharding on v7x).
    batch, in_dim, hidden_dim, out_dim = 300, 32, 64, 16

    key = jax.random.PRNGKey(0)
    kx, kp = jax.random.split(key)
    x = jax.random.normal(kx, (batch, in_dim), jnp.float32)
    w1, b1, w2, b2 = init_params(kp, in_dim, hidden_dim, out_dim)

    ref = reference_forward(x, w1, b1, w2, b2)

    # f32 compute path, Pallas forced (these shapes would auto-dispatch to XLA).
    p32 = prepare_params(w1, b1, w2, b2, compute_dtype=jnp.float32)
    y32 = jax.block_until_ready(cognitive_observer_forward(x, p32, force_pallas=True))
    assert y32.shape == (batch, out_dim)
    assert jnp.allclose(y32, ref, atol=1e-5, rtol=1e-5)

    # bf16 MXU path (performance default): loose tolerance vs the f32 reference.
    p16 = prepare_params(w1, b1, w2, b2)   # bf16 weights, f32 biases, prepared ONCE
    y16 = jax.block_until_ready(cognitive_observer_forward(x, p16, force_pallas=True))
    assert y16.shape == (batch, out_dim)
    assert jnp.allclose(y16, ref, atol=5e-2, rtol=5e-2)

    # Auto size-based dispatch: this tiny problem routes to plain XLA fusion.
    y_auto = jax.block_until_ready(cognitive_observer_forward(x, p32))
    assert jnp.allclose(y_auto, ref, atol=1e-5, rtol=1e-5)

    # TODO(synk): add_noise / apply_rounding / compute_kernel_entropy are optional
    # inference-time utilities (not part of forward); they stay in plain JAX.
    print("KERNEL_OK")
</pallas_src>

<mosaic_0001>
module attributes {stable_mosaic.version = 11 : i64} {
  func.func @_mlp_kernel(%arg0: i32, %arg1: memref<80x32xf32, #tpu.memory_space<vmem>>, %arg2: memref<32x64xf32, #tpu.memory_space<vmem>>, %arg3: memref<1x64xf32, #tpu.memory_space<vmem>>, %arg4: memref<64x16xf32, #tpu.memory_space<vmem>>, %arg5: memref<1x16xf32, #tpu.memory_space<vmem>>, %arg6: memref<80x16xf32, #tpu.memory_space<vmem>>) attributes {dimension_semantics = [#tpu.dimension_semantics<parallel>], iteration_bounds = array<i64: 4>, scalar_prefetch = 0 : i64, scratch_operands = 0 : i64, tpu.core_type = #tpu.core_type<tc>, window_params = [{transform_indices = @transform_0, window_bounds = array<i64: 80, 32>}, {pipeline_mode = #tpu.pipeline_mode<synchronous>, transform_indices = @transform_1, window_bounds = array<i64: 32, 64>}, {pipeline_mode = #tpu.pipeline_mode<synchronous>, transform_indices = @transform_2, window_bounds = array<i64: 1, 64>}, {pipeline_mode = #tpu.pipeline_mode<synchronous>, transform_indices = @transform_3, window_bounds = array<i64: 64, 16>}, {pipeline_mode = #tpu.pipeline_mode<synchronous>, transform_indices = @transform_4, window_bounds = array<i64: 1, 16>}, {transform_indices = @transform_5, window_bounds = array<i64: 80, 16>}]} {
    %c0 = arith.constant 0 : index
    %c0_0 = arith.constant 0 : index
    %0 = vector.load %arg1[%c0, %c0_0] : memref<80x32xf32, #tpu.memory_space<vmem>>, vector<80x32xf32>
    %c0_1 = arith.constant 0 : index
    %c0_2 = arith.constant 0 : index
    %1 = vector.load %arg2[%c0_1, %c0_2] : memref<32x64xf32, #tpu.memory_space<vmem>>, vector<32x64xf32>
    %cst = arith.constant dense<0.000000e+00> : vector<80x64xf32>
    %2 = tpu.matmul %0, %1, %cst {dimension_numbers = #tpu.dot_dimension_numbers<[1], [0], [0], [1], [0, 0, 1, 1], [], []>} : vector<80x32xf32>, vector<32x64xf32>, vector<80x64xf32> -> vector<80x64xf32>
    %c0_3 = arith.constant 0 : index
    %c0_4 = arith.constant 0 : index
    %3 = vector.load %arg3[%c0_3, %c0_4] : memref<1x64xf32, #tpu.memory_space<vmem>>, vector<1x64xf32>
    %4 = vector.broadcast %3 : vector<1x64xf32> to vector<80x64xf32>
    %5 = arith.addf %2, %4 : vector<80x64xf32>
    %cst_5 = arith.constant 0.000000e+00 : f32
    %6 = vector.broadcast %cst_5 : f32 to vector<80x64xf32>
    %7 = arith.maximumf %5, %6 : vector<80x64xf32>
    %c0_6 = arith.constant 0 : index
    %c0_7 = arith.constant 0 : index
    %8 = vector.load %arg4[%c0_6, %c0_7] : memref<64x16xf32, #tpu.memory_space<vmem>>, vector<64x16xf32>
    %cst_8 = arith.constant dense<0.000000e+00> : vector<80x16xf32>
    %9 = tpu.matmul %7, %8, %cst_8 {dimension_numbers = #tpu.dot_dimension_numbers<[1], [0], [0], [1], [0, 0, 1, 1], [], []>} : vector<80x64xf32>, vector<64x16xf32>, vector<80x16xf32> -> vector<80x16xf32>
    %c0_9 = arith.constant 0 : index
    %c0_10 = arith.constant 0 : index
    %10 = vector.load %arg5[%c0_9, %c0_10] : memref<1x16xf32, #tpu.memory_space<vmem>>, vector<1x16xf32>
    %11 = vector.broadcast %10 : vector<1x16xf32> to vector<80x16xf32>
    %12 = arith.addf %9, %11 : vector<80x16xf32>
    %c0_11 = arith.constant 0 : index
    %c0_12 = arith.constant 0 : index
    %13 = vector.load %arg6[%c0_11, %c0_12] : memref<80x16xf32, #tpu.memory_space<vmem>>, vector<80x16xf32>
    tpu.vector_store %arg6[%c0_11, %c0_12], %12 {strides = array<i32>} : memref<80x16xf32, #tpu.memory_space<vmem>>, vector<80x16xf32>,
    return
  }
  func.func @transform_0(%arg0: i32) -> (i32, i32) {
    %c0_i32 = arith.constant 0 : i32
    %c0_i32_0 = arith.constant 0 : i32
    return %arg0, %c0_i32 : i32, i32
  }
  func.func @transform_1(%arg0: i32) -> (i32, i32) {
    %c0_i32 = arith.constant 0 : i32
    %c0_i32_0 = arith.constant 0 : i32
    %c0_i32_1 = arith.constant 0 : i32
    return %c0_i32, %c0_i32_0 : i32, i32
  }
  func.func @transform_2(%arg0: i32) -> (i32, i32) {
    %c0_i32 = arith.constant 0 : i32
    %c0_i32_0 = arith.constant 0 : i32
    %c0_i32_1 = arith.constant 0 : i32
    return %c0_i32, %c0_i32_0 : i32, i32
  }
  func.func @transform_3(%arg0: i32) -> (i32, i32) {
    %c0_i32 = arith.constant 0 : i32
    %c0_i32_0 = arith.constant 0 : i32
    %c0_i32_1 = arith.constant 0 : i32
    return %c0_i32, %c0_i32_0 : i32, i32
  }
  func.func @transform_4(%arg0: i32) -> (i32, i32) {
    %c0_i32 = arith.constant 0 : i32
    %c0_i32_0 = arith.constant 0 : i32
    %c0_i32_1 = arith.constant 0 : i32
    return %c0_i32, %c0_i32_0 : i32, i32
  }
  func.func @transform_5(%arg0: i32) -> (i32, i32) {
    %c0_i32 = arith.constant 0 : i32
    %c0_i32_0 = arith.constant 0 : i32
    return %arg0, %c0_i32 : i32, i32
  }
}

module attributes {stable_mosaic.version = 11 : i64} {
  func.func @_mlp_kernel(%arg0: i32, %arg1: memref<80x32xf32, #tpu.memory_space<vmem>>, %arg2: memref<32x64xf32, #tpu.memory_space<vmem>>, %arg3: memref<1x64xf32, #tpu.memory_space<vmem>>, %arg4: memref<64x16xf32, #tpu.memory_space<vmem>>, %arg5: memref<1x16xf32, #tpu.memory_space<vmem>>, %arg6: memref<80x16xf32, #tpu.memory_space<vmem>>) attributes {dimension_semantics = [#tpu.dimension_semantics<parallel>], iteration_bounds = array<i64: 4>, scalar_prefetch = 0 : i64, scratch_operands = 0 : i64, tpu.core_type = #tpu.core_type<tc>, window_params = [{transform_indices = @transform_0, window_bounds = array<i64: 80, 32>}, {pipeline_mode = #tpu.pipeline_mode<synchronous>, transform_indices = @transform_1, window_bounds = array<i64: 32, 64>}, {pipeline_mode = #tpu.pipeline_mode<synchronous>, transform_indices = @transform_2, window_bounds = array<i64: 1, 64>}, {pipeline_mode = #tpu.pipeline_mode<synchronous>, transform_indices = @transform_3, window_bounds = array<i64: 64, 16>}, {pipeline_mode = #tpu.pipeline_mode<synchronous>, transform_indices = @transform_4, window_bounds = array<i64: 1, 16>}, {transform_indices = @transform_5, window_bounds = array<i64: 80, 16>}]} {
    %c0 = arith.constant 0 : index
    %c0_0 = arith.constant 0 : index
    %0 = vector.load %arg1[%c0, %c0_0] : memref<80x32xf32, #tpu.memory_space<vmem>>, vector<80x32xf32>
    %c0_1 = arith.constant 0 : index
    %c0_2 = arith.constant 0 : index
    %1 = vector.load %arg2[%c0_1, %c0_2] : memref<32x64xf32, #tpu.memory_space<vmem>>, vector<32x64xf32>
    %cst = arith.constant dense<0.000000e+00> : vector<80x64xf32>
    %2 = tpu.matmul %0, %1, %cst {dimension_numbers = #tpu.dot_dimension_numbers<[1], [0], [0], [1], [0, 0, 1, 1], [], []>} : vector<80x32xf32>, vector<32x64xf32>, vector<80x64xf32> -> vector<80x64xf32>
    %c0_3 = arith.constant 0 : index
    %c0_4 = arith.constant 0 : index
    %3 = vector.load %arg3[%c0_3, %c0_4] : memref<1x64xf32, #tpu.memory_space<vmem>>, vector<1x64xf32>
    %4 = vector.broadcast %3 : vector<1x64xf32> to vector<80x64xf32>
    %5 = arith.addf %2, %4 : vector<80x64xf32>
    %cst_5 = arith.constant 0.000000e+00 : f32
    %6 = vector.broadcast %cst_5 : f32 to vector<80x64xf32>
    %7 = arith.maximumf %5, %6 : vector<80x64xf32>
    %c0_6 = arith.constant 0 : index
    %c0_7 = arith.constant 0 : index
    %8 = vector.load %arg4[%c0_6, %c0_7] : memref<64x16xf32, #tpu.memory_space<vmem>>, vector<64x16xf32>
    %cst_8 = arith.constant dense<0.000000e+00> : vector<80x16xf32>
    %9 = tpu.matmul %7, %8, %cst_8 {dimension_numbers = #tpu.dot_dimension_numbers<[1], [0], [0], [1], [0, 0, 1, 1], [], []>} : vector<80x64xf32>, vector<64x16xf32>, vector<80x16xf32> -> vector<80x16xf32>
    %c0_9 = arith.constant 0 : index
    %c0_10 = arith.constant 0 : index
    %10 = vector.load %arg5[%c0_9, %c0_10] : memref<1x16xf32, #tpu.memory_space<vmem>>, vector<1x16xf32>
    %11 = vector.broadcast %10 : vector<1x16xf32> to vector<80x16xf32>
    %12 = arith.addf %9, %11 : vector<80x16xf32>
    %c0_11 = arith.constant 0 : index
    %c0_12 = arith.constant 0 : index
    %13 = vector.load %arg6[%c0_11, %c0_12] : memref<80x16xf32, #tpu.memory_space<vmem>>, vector<80x16xf32>
    tpu.vector_store %arg6[%c0_11, %c0_12], %12 {strides = array<i32>} : memref<80x16xf32, #tpu.memory_space<vmem>>, vector<80x16xf32>,
    return
  }
  func.func @transform_0(%arg0: i32) -> (i32, i32) {
    %c0_i32 = arith.constant 0 : i32
    %c0_i32_0 = arith.constant 0 : i32
    return %arg0, %c0_i32 : i32, i32
  }
  func.func @transform_1(%arg0: i32) -> (i32, i32) {
    %c0_i32 = arith.constant 0 : i32
    %c0_i32_0 = arith.constant 0 : i32
    %c0_i32_1 = arith.constant 0 : i32
    return %c0_i32, %c0_i32_0 : i32, i32
  }
  func.func @transform_2(%arg0: i32) -> (i32, i32) {
    %c0_i32 = arith.constant 0 : i32
    %c0_i32_0 = arith.constant 0 : i32
    %c0_i32_1 = arith.constant 0 : i32
    return %c0_i32, %c0_i32_0 : i32, i32
  }
  func.func @transform_3(%arg0: i32) -> (i32, i32) {
    %c0_i32 = arith.constant 0 : i32
    %c0_i32_0 = arith.constant 0 : i32
    %c0_i32_1 = arith.constant 0 : i32
    return %c0_i32, %c0_i32_0 : i32, i32
  }
  func.func @transform_4(%arg0: i32) -> (i32, i32) {
    %c0_i32 = arith.constant 0 : i32
    %c0_i32_0 = arith.constant 0 : i32
    %c0_i32_1 = arith.constant 0 : i32
    return %c0_i32, %c0_i32_0 : i32, i32
  }
  func.func @transform_5(%arg0: i32) -> (i32, i32) {
    %c0_i32 = arith.constant 0 : i32
    %c0_i32_0 = arith.constant 0 : i32
    return %arg0, %c0_i32 : i32, i32
  }
}

</mosaic_0001>

<bundles_post_ra>
// kernel: tpu_custom_call.1
= control target key start
LH: loop header
LB: loop body
LE: loop exit
PB: predicated region body
PF: predicated region fallthrough
CT: control target
= control target key end

     0   :  { %s828_s18 = smov 0   ;;  %s936_s0 = inlined_call_operand.vmem [shape: f32[320,32], index: 0, kind: input, shape index: {}]   ;;  %s937_s1 = inlined_call_operand.vmem [shape: f32[32,64], index: 1, kind: input, shape index: {}]   ;;  %s938_s2 = inlined_call_operand.vmem [shape: f32[1,64], index: 2, kind: input, shape index: {}]   ;;  %s939_s3 = inlined_call_operand.vmem [shape: f32[64,16], index: 3, kind: input, shape index: {}]   ;;  %s940_s4 = inlined_call_operand.vmem [shape: f32[1,16], index: 4, kind: input, shape index: {}]   ;;  %s941_s5 = inlined_call_operand.vmem [shape: f32[320,16], index: 5, kind: output, shape index: {}]  }
   0x1 LB: > { %s633_s19 = sadd.s32 4294967295, %s796_s18   ;;  %p637_p0 = scmp.ge.s32.totalorder %s796_s18, 1  ;;  %s796_s18 = sphi %s828_s18, %s15_s18  }
   0x2   : > { %p188_p1 = scmp.lt.s32.totalorder %s796_s18, 5 }
   0x4   : > { %p189_p2 = pnand %p637_p0, %p188_p1 }
   0x5   : > { %v238_v0 = vld [vmem:[%s937_s1] sm:$0xff] (!%p189_p2)  ;;  %v239_v1 = vld [vmem:[%s937_s1 + $0x8] sm:$0xff] (!%p189_p2)  ;;  %v240_v2 = vld [vmem:[%s937_s1 + $0x10] sm:$0xff] (!%p189_p2)  ;;  %s216_s26 = smul.u32 (!%p189_p2), 10, %s633_s19  ;;  %vm249_vm0 = vcmask (!%p189_p2), 261120   ;;  %vm420_vm1 = vcmask (!%p189_p2), 523264  }
   0x6   : > { %192 = sbr.rel (%p189_p2) target bundleno = 468 (0x1d4), region = 40  ;;  %v750_v3 = vpack.c.bf16 (!%p189_p2), %v239_v1, %v238_v0  ;;  %v241_v4 = vld [vmem:[%s937_s1 + $0x18] sm:$0xff] (!%p189_p2)  ;;  %v405_v5 = vld [vmem:[%s939_s3] sm:$0xff] (!%p189_p2)  ;;  %v406_v6 = vld [vmem:[%s939_s3 + $0x8] sm:$0xff] (!%p189_p2)  ;;  %vm566_vm2 = vcmask (!%p189_p2), 130048  }
   0x7   : > { %v754_v7 = vpack.c.bf16 (!%p189_p2), %v241_v4, %v240_v2  ;;  %p217_p3 = scmp.lt.s32.totalorder (!%p189_p2), %s216_s26, 39  ;;  %v758_v8 = vpack.c.bf16 (!%p189_p2), %v406_v6, %v405_v5  ;;  %v407_v9 = vld [vmem:[%s939_s3 + $0x10] sm:$0xff] (!%p189_p2)  ;;  %v408_v10 = vld [vmem:[%s939_s3 + $0x18] sm:$0xff] (!%p189_p2)  ;;  %v409_v12 = vld [vmem:[%s939_s3 + $0x20] sm:$0xff] (!%p189_p2) }
   0x8   : > { %751 = vmatprep.subr.bf16.mxu0 (!%p189_p2), %v750_v3  ;;  %v762_v11 = vpack.c.bf16 (!%p189_p2), %v408_v10, %v407_v9  ;;  %v410_v13 = vld [vmem:[%s939_s3 + $0x28] sm:$0xff] (!%p189_p2)  ;;  %v411_v25 = vld [vmem:[%s939_s3 + $0x30] sm:$0xff] (!%p189_p2)  ;;  %v412_v26 = vld [vmem:[%s939_s3 + $0x38] sm:$0xff] (!%p189_p2) }
   0x9   : > { %753 = vmatpush3.bf16.msra.mxu0 (!%p189_p2), %v750_v3  ;;  %774 = vmatprep.subr.bf16.mxu1 (!%p189_p2), %v758_v8  ;;  %v766_v17 = vpack.c.bf16 (!%p189_p2), %v410_v13, %v409_v12  ;;  %v770_v27 = vpack.c.bf16 (!%p189_p2), %v412_v26, %v411_v25  ;;  %v640_v28 = vld [vmem:[%s938_s2] ss:$0 sm:$0xff] (!%p189_p2) }
   0xa   : > { %755 = vmatprep.subr.bf16.mxu0 (!%p189_p2), %v754_v7  ;;  %778 = vmatpush3.bf16.msra.mxu1 (!%p189_p2), %v758_v8  ;;  %v651_v59 = vld [vmem:[%s940_s4] ss:$0 sm:$0xff] (!%p189_p2) }
   0xb   : > { %775 = vmatprep.subr.bf16.mxu1 (!%p189_p2), %v762_v11 }
   0xd   : > { %s943_s26 = smov (!%p217_p3, %s216_s26), 39  ;;  %757 = vmatpush3.bf16.msra.mxu0 %v754_v7 }
   0xe   : > { %s638_s12 = sshll.u32 %s943_s26, 3  ;;  %759 = vmatprep.subr.bf16.mxu0 %v758_v8  ;;  %779 = vmatpush3.bf16.msra.mxu1 %v762_v11 }
   0xf   : > { %s220_s20 = scalar_lea.vmem %s936_s0, %s638_s12  ;;  %776 = vmatprep.subr.bf16.mxu1 %v766_v17  ;;  %s911_s7 = scalar_lea.vmem %s941_s5, %s638_s12 }
  0x10   : > { %v228_v14 = vld [vmem:[%s220_s20] sm:$0xff]  ;;  %v229_v15 = vld [vmem:[%s220_s20 + $0x8] sm:$0xff]  ;;  %v230_v16 = vld [vmem:[%s220_s20 + $0x10] sm:$0xff] }
  0x11   : > { %704 = vmatprep.mubr.msk.f32.mxu0 %vm249_vm0, %v228_v14  ;;  %v231_v18 = vld [vmem:[%s220_s20 + $0x18] sm:$0xff]  ;;  %v232_v19 = vld [vmem:[%s220_s20 + $0x20] sm:$0xff]  ;;  %v233_v20 = vld [vmem:[%s220_s20 + $0x28] sm:$0xff] }
  0x12   : > { %705 = vmatmul.mubr.msk.f32.vlgmr.msra.gmra.mrb[0].mxu0 %vm249_vm0, %v229_v15  ;;  %780 = vmatpush3.bf16.msra.mxu1 %v766_v17  ;;  %v234_v21 = vld [vmem:[%s220_s20 + $0x30] sm:$0xff]  ;;  %v235_v22 = vld [vmem:[%s220_s20 + $0x38] sm:$0xff]  ;;  %v236_v23 = vld [vmem:[%s220_s20 + $0x40] sm:$0xff] }
  0x13   : > { %707 = vmatprep.mubr.msk.f32.mxu0 %vm249_vm0, %v230_v16  ;;  %761 = vmatpush3.bf16.msra.mxu0 %v758_v8  ;;  %v237_v24 = vld [vmem:[%s220_s20 + $0x48] sm:$0xff] }
  0x14   : > { %763 = vmatprep.subr.bf16.mxu0 %v762_v11  ;;  %777 = vmatprep.subr.bf16.mxu1 %v770_v27 }
  0x16   : > { %708 = vmatmul.mubr.msk.f32.gmra.mrb[2].mxu0 %vm249_vm0, %v231_v18  ;;  %781 = vmatpush3.bf16.msra.mxu1 %v770_v27 }
  0x17   : > { %710 = vmatprep.mubr.msk.f32.mxu0 %vm249_vm0, %v232_v19  ;;  %765 = vmatpush3.bf16.msra.mxu0 %v762_v11 }
  0x18   : > { %767 = vmatprep.subr.bf16.mxu0 %v766_v17 }
  0x1a   : > { %711 = vmatmul.mubr.msk.f32.gmra.mrb[4].mxu0 %vm249_vm0, %v233_v20 }
  0x1b   : > { %713 = vmatprep.mubr.msk.f32.mxu0 %vm249_vm0, %v234_v21  ;;  %769 = vmatpush3.bf16.msra.mxu0 %v766_v17 }
  0x1c   : > { %771 = vmatprep.subr.bf16.mxu0 %v770_v27 }
  0x1e   : > { %714 = vmatmul.mubr.msk.f32.gmra.mrb[6].mxu0 %vm249_vm0, %v235_v22 }
  0x1f   : > { %716 = vmatprep.mubr.msk.f32.mxu0 %vm249_vm0, %v236_v23  ;;  %773 = vmatpush3.bf16.msra.mxu0 %v770_v27 }
  0x22   : > { %717 = vmatmul.mubr.msk.f32.gmra.mrb[8].mxu0 %vm249_vm0, %v237_v24 }
  0xe5   : > { %v706_v29 = vpop.f32.mrb[0].mxu0 }
  0xe6   : > { %v352_v30 = vadd.f32 %v706_v29, %v640_v28  ;;  %v346_v31 = vpop.f32.mrb[1].mxu0 }
  0xe7   : > { %v347_v32 = vadd.f32 %v640_v28, %v346_v31 }
  0xe8   : > { %v396_v35 = vmax.f32 %v352_v30, 0.0 }
  0xe9   : > { %v395_v33 = vmax.f32 %v347_v32, 0.0  ;;  %v709_v34 = vpop.f32.mrb[2].mxu0 }
  0xea   : > { %v362_v36 = vadd.f32 %v709_v34, %v640_v28  ;;  %v356_v37 = vpop.f32.mrb[3].mxu0 }
  0xeb   : > { %v357_v38 = vadd.f32 %v640_v28, %v356_v37  ;;  %735 = vmatprep.mubr.msk.f32.mxu0 %vm420_vm1, %v395_v33 }
  0xec   : > { %736 = vmatmul.mubr.msk.f32.vlgmr.msra.gmra.mrb[10].mxu0 %vm420_vm1, %v396_v35  ;;  %v398_v41 = vmax.f32 %v362_v36, 0.0 }
  0xed   : > { %v397_v39 = vmax.f32 %v357_v38, 0.0  ;;  %v712_v40 = vpop.f32.mrb[4].mxu0 }
  0xee   : > { %v372_v42 = vadd.f32 %v712_v40, %v640_v28  ;;  %v366_v43 = vpop.f32.mrb[5].mxu0 }
  0xef   : > { %v367_v44 = vadd.f32 %v640_v28, %v366_v43  ;;  %738 = vmatprep.mubr.msk.f32.mxu1 %vm420_vm1, %v397_v39 }
  0xf0   : > { %739 = vmatmul.mubr.msk.f32.vlgmr.msra.gmra.mrb[0].mxu1 %vm420_vm1, %v398_v41  ;;  %v400_v47 = vmax.f32 %v372_v42, 0.0 }
  0xf1   : > { %v399_v45 = vmax.f32 %v367_v44, 0.0  ;;  %v715_v46 = vpop.f32.mrb[6].mxu0 }
  0xf2   : > { %v382_v48 = vadd.f32 %v715_v46, %v640_v28  ;;  %v376_v49 = vpop.f32.mrb[7].mxu0 }
  0xf3   : > { %v377_v50 = vadd.f32 %v640_v28, %v376_v49  ;;  %741 = vmatprep.mubr.msk.f32.mxu1 %vm420_vm1, %v399_v45 }
  0xf4   : > { %742 = vmatmul.mubr.msk.f32.gmra.mrb[2].mxu1 %vm420_vm1, %v400_v47  ;;  %v402_v53 = vmax.f32 %v382_v48, 0.0 }
  0xf5   : > { %v401_v51 = vmax.f32 %v377_v50, 0.0  ;;  %v718_v52 = vpop.f32.mrb[8].mxu0 }
  0xf6   : > { %v392_v54 = vadd.f32 %v718_v52, %v640_v28  ;;  %v386_v55 = vpop.f32.mrb[9].mxu0 }
  0xf7   : > { %v387_v56 = vadd.f32 %v640_v28, %v386_v55  ;;  %744 = vmatprep.mubr.msk.f32.mxu1 %vm420_vm1, %v401_v51 }
  0xf8   : > { %745 = vmatmul.mubr.msk.f32.gmra.mrb[4].mxu1 %vm420_vm1, %v402_v53  ;;  %v404_v58 = vmax.f32 %v392_v54, 0.0 }
  0xf9   : > { %v403_v57 = vmax.f32 %v387_v56, 0.0 }
  0xfb   : > { %747 = vmatprep.mubr.msk.f32.mxu1 %vm420_vm1, %v403_v57 }
  0xfc   : > { %748 = vmatmul.mubr.msk.f32.gmra.mrb[6].mxu1 %vm420_vm1, %v404_v58 }
 0x1bf   : > { %v737_v60 = vpop.f32.mrb[10].mxu0 }
 0x1c0   : > { %v523_v61 = vadd.f32 %v737_v60, %v651_v59  ;;  %v517_v62 = vpop.f32.mrb[11].mxu0 }
 0x1c1   : > { %v518_v63 = vadd.f32 %v651_v59, %v517_v62 }
 0x1c2   : > { %568 = vst.msk [vmem:[%s911_s7 + $0x8] sm:$0xff] %vm566_vm2, %v523_v61 }
 0x1c3   : > { %567 = vst.msk [vmem:[%s911_s7] sm:$0xff] %vm566_vm2, %v518_v63  ;;  %v740_v0 = vpop.f32.mrb[0].mxu1 }
 0x1c4   : > { %v533_v1 = vadd.f32 %v740_v0, %v651_v59  ;;  %v527_v2 = vpop.f32.mrb[1].mxu1 }
 0x1c5   : > { %v528_v3 = vadd.f32 %v651_v59, %v527_v2 }
 0x1c6   : > { %570 = vst.msk [vmem:[%s911_s7 + $0x18] sm:$0xff] %vm566_vm2, %v533_v1 }
 0x1c7   : > { %569 = vst.msk [vmem:[%s911_s7 + $0x10] sm:$0xff] %vm566_vm2, %v528_v3  ;;  %v743_v4 = vpop.f32.mrb[2].mxu1 }
 0x1c8   : > { %v543_v5 = vadd.f32 %v743_v4, %v651_v59  ;;  %v537_v6 = vpop.f32.mrb[3].mxu1 }
 0x1c9   : > { %v538_v7 = vadd.f32 %v651_v59, %v537_v6 }
 0x1ca   : > { %572 = vst.msk [vmem:[%s911_s7 + $0x28] sm:$0xff] %vm566_vm2, %v543_v5 }
 0x1cb   : > { %571 = vst.msk [vmem:[%s911_s7 + $0x20] sm:$0xff] %vm566_vm2, %v538_v7  ;;  %v746_v8 = vpop.f32.mrb[4].mxu1 }
 0x1cc   : > { %v553_v9 = vadd.f32 %v746_v8, %v651_v59  ;;  %v547_v10 = vpop.f32.mrb[5].mxu1 }
 0x1cd   : > { %v548_v11 = vadd.f32 %v651_v59, %v547_v10 }
 0x1ce   : > { %574 = vst.msk [vmem:[%s911_s7 + $0x38] sm:$0xff] %vm566_vm2, %v553_v9 }
 0x1cf   : > { %573 = vst.msk [vmem:[%s911_s7 + $0x30] sm:$0xff] %vm566_vm2, %v548_v11  ;;  %v749_v12 = vpop.f32.mrb[6].mxu1 }
 0x1d0   : > { %v563_v13 = vadd.f32 %v749_v12, %v651_v59  ;;  %v557_v14 = vpop.f32.mrb[7].mxu1 }
 0x1d1   : > { %v558_v15 = vadd.f32 %v651_v59, %v557_v14 }
 0x1d2   : > { %576 = vst.msk [vmem:[%s911_s7 + $0x48] sm:$0xff] %vm566_vm2, %v563_v13 }
 0x1d3   : > { %575 = vst.msk [vmem:[%s911_s7 + $0x40] sm:$0xff] %vm566_vm2, %v558_v15 }
 0x1d4 PF: > { %s15_s18 = sadd.s32 1, %s796_s18  }
 0x1d5   : > { %p12_p4 = scmp.ge.s32.totalorder %s15_s18, 6  }
 0x1d7   :  { %14 = sbr.rel (!%p12_p4) target bundleno = 1 (0x1), region = 70 }

// kernel: tpu_custom_call.1
= control target key start
LH: loop header
LB: loop body
LE: loop exit
PB: predicated region body
PF: predicated region fallthrough
CT: control target
= control target key end

     0   :  { %s828_s18 = smov 0   ;;  %s936_s0 = inlined_call_operand.vmem [shape: f32[320,32], index: 0, kind: input, shape index: {}]   ;;  %s937_s1 = inlined_call_operand.vmem [shape: f32[32,64], index: 1, kind: input, shape index: {}]   ;;  %s938_s2 = inlined_call_operand.vmem [shape: f32[1,64], index: 2, kind: input, shape index: {}]   ;;  %s939_s3 = inlined_call_operand.vmem [shape: f32[64,16], index: 3, kind: input, shape index: {}]   ;;  %s940_s4 = inlined_call_operand.vmem [shape: f32[1,16], index: 4, kind: input, shape index: {}]   ;;  %s941_s5 = inlined_call_operand.vmem [shape: f32[320,16], index: 5, kind: output, shape index: {}]  }
   0x1 LB: > { %s633_s19 = sadd.s32 4294967295, %s796_s18   ;;  %p637_p0 = scmp.ge.s32.totalorder %s796_s18, 1  ;;  %s796_s18 = sphi %s828_s18, %s15_s18  }
   0x2   : > { %p188_p1 = scmp.lt.s32.totalorder %s796_s18, 5 }
   0x4   : > { %p189_p2 = pnand %p637_p0, %p188_p1 }
   0x5   : > { %v238_v0 = vld [vmem:[%s937_s1] sm:$0xff] (!%p189_p2)  ;;  %v239_v1 = vld [vmem:[%s937_s1 + $0x8] sm:$0xff] (!%p189_p2)  ;;  %v240_v2 = vld [vmem:[%s937_s1 + $0x10] sm:$0xff] (!%p189_p2)  ;;  %s216_s26 = smul.u32 (!%p189_p2), 10, %s633_s19  ;;  %vm249_vm0 = vcmask (!%p189_p2), 261120   ;;  %vm420_vm1 = vcmask (!%p189_p2), 523264  }
   0x6   : > { %192 = sbr.rel (%p189_p2) target bundleno = 468 (0x1d4), region = 40  ;;  %v750_v3 = vpack.c.bf16 (!%p189_p2), %v239_v1, %v238_v0  ;;  %v241_v4 = vld [vmem:[%s937_s1 + $0x18] sm:$0xff] (!%p189_p2)  ;;  %v405_v5 = vld [vmem:[%s939_s3] sm:$0xff] (!%p189_p2)  ;;  %v406_v6 = vld [vmem:[%s939_s3 + $0x8] sm:$0xff] (!%p189_p2)  ;;  %vm566_vm2 = vcmask (!%p189_p2), 130048  }
   0x7   : > { %v754_v7 = vpack.c.bf16 (!%p189_p2), %v241_v4, %v240_v2  ;;  %p217_p3 = scmp.lt.s32.totalorder (!%p189_p2), %s216_s26, 39  ;;  %v758_v8 = vpack.c.bf16 (!%p189_p2), %v406_v6, %v405_v5  ;;  %v407_v9 = vld [vmem:[%s939_s3 + $0x10] sm:$0xff] (!%p189_p2)  ;;  %v408_v10 = vld [vmem:[%s939_s3 + $0x18] sm:$0xff] (!%p189_p2)  ;;  %v409_v12 = vld [vmem:[%s939_s3 + $0x20] sm:$0xff] (!%p189_p2) }
   0x8   : > { %751 = vmatprep.subr.bf16.mxu0 (!%p189_p2), %v750_v3  ;;  %v762_v11 = vpack.c.bf16 (!%p189_p2), %v408_v10, %v407_v9  ;;  %v410_v13 = vld [vmem:[%s939_s3 + $0x28] sm:$0xff] (!%p189_p2)  ;;  %v411_v25 = vld [vmem:[%s939_s3 + $0x30] sm:$0xff] (!%p189_p2)  ;;  %v412_v26 = vld [vmem:[%s939_s3 + $0x38] sm:$0xff] (!%p189_p2) }
   0x9   : > { %753 = vmatpush3.bf16.msra.mxu0 (!%p189_p2), %v750_v3  ;;  %774 = vmatprep.subr.bf16.mxu1 (!%p189_p2), %v758_v8  ;;  %v766_v17 = vpack.c.bf16 (!%p189_p2), %v410_v13, %v409_v12  ;;  %v770_v27 = vpack.c.bf16 (!%p189_p2), %v412_v26, %v411_v25  ;;  %v640_v28 = vld [vmem:[%s938_s2] ss:$0 sm:$0xff] (!%p189_p2) }
   0xa   : > { %755 = vmatprep.subr.bf16.mxu0 (!%p189_p2), %v754_v7  ;;  %778 = vmatpush3.bf16.msra.mxu1 (!%p189_p2), %v758_v8  ;;  %v651_v59 = vld [vmem:[%s940_s4] ss:$0 sm:$0xff] (!%p189_p2) }
   0xb   : > { %775 = vmatprep.subr.bf16.mxu1 (!%p189_p2), %v762_v11 }
   0xd   : > { %s943_s26 = smov (!%p217_p3, %s216_s26), 39  ;;  %757 = vmatpush3.bf16.msra.mxu0 %v754_v7 }
   0xe   : > { %s638_s12 = sshll.u32 %s943_s26, 3  ;;  %759 = vmatprep.subr.bf16.mxu0 %v758_v8  ;;  %779 = vmatpush3.bf16.msra.mxu1 %v762_v11 }
   0xf   : > { %s220_s20 = scalar_lea.vmem %s936_s0, %s638_s12  ;;  %776 = vmatprep.subr.bf16.mxu1 %v766_v17  ;;  %s911_s7 = scalar_lea.vmem %s941_s5, %s638_s12 }
  0x10   : > { %v228_v14 = vld [vmem:[%s220_s20] sm:$0xff]  ;;  %v229_v15 = vld [vmem:[%s220_s20 + $0x8] sm:$0xff]  ;;  %v230_v16 = vld [vmem:[%s220_s20 + $0x10] sm:$0xff] }
  0x11   : > { %704 = vmatprep.mubr.msk.f32.mxu0 %vm249_vm0, %v228_v14  ;;  %v231_v18 = vld [vmem:[%s220_s20 + $0x18] sm:$0xff]  ;;  %v232_v19 = vld [vmem:[%s220_s20 + $0x20] sm:$0xff]  ;;  %v233_v20 = vld [vmem:[%s220_s20 + $0x28] sm:$0xff] }
  0x12   : > { %705 = vmatmul.mubr.msk.f32.vlgmr.msra.gmra.mrb[0].mxu0 %vm249_vm0, %v229_v15  ;;  %780 = vmatpush3.bf16.msra.mxu1 %v766_v17  ;;  %v234_v21 = vld [vmem:[%s220_s20 + $0x30] sm:$0xff]  ;;  %v235_v22 = vld [vmem:[%s220_s20 + $0x38] sm:$0xff]  ;;  %v236_v23 = vld [vmem:[%s220_s20 + $0x40] sm:$0xff] }
  0x13   : > { %707 = vmatprep.mubr.msk.f32.mxu0 %vm249_vm0, %v230_v16  ;;  %761 = vmatpush3.bf16.msra.mxu0 %v758_v8  ;;  %v237_v24 = vld [vmem:[%s220_s20 + $0x48] sm:$0xff] }
  0x14   : > { %763 = vmatprep.subr.bf16.mxu0 %v762_v11  ;;  %777 = vmatprep.subr.bf16.mxu1 %v770_v27 }
  0x16   : > { %708 = vmatmul.mubr.msk.f32.gmra.mrb[2].mxu0 %vm249_vm0, %v231_v18  ;;  %781 = vmatpush3.bf16.msra.mxu1 %v770_v27 }
  0x17   : > { %710 = vmatprep.mubr.msk.f32.mxu0 %vm249_vm0, %v232_v19  ;;  %765 = vmatpush3.bf16.msra.mxu0 %v762_v11 }
  0x18   : > { %767 = vmatprep.subr.bf16.mxu0 %v766_v17 }
  0x1a   : > { %711 = vmatmul.mubr.msk.f32.gmra.mrb[4].mxu0 %vm249_vm0, %v233_v20 }
  0x1b   : > { %713 = vmatprep.mubr.msk.f32.mxu0 %vm249_vm0, %v234_v21  ;;  %769 = vmatpush3.bf16.msra.mxu0 %v766_v17 }
  0x1c   : > { %771 = vmatprep.subr.bf16.mxu0 %v770_v27 }
  0x1e   : > { %714 = vmatmul.mubr.msk.f32.gmra.mrb[6].mxu0 %vm249_vm0, %v235_v22 }
  0x1f   : > { %716 = vmatprep.mubr.msk.f32.mxu0 %vm249_vm0, %v236_v23  ;;  %773 = vmatpush3.bf16.msra.mxu0 %v770_v27 }
  0x22   : > { %717 = vmatmul.mubr.msk.f32.gmra.mrb[8].mxu0 %vm249_vm0, %v237_v24 }
  0xe5   : > { %v706_v29 = vpop.f32.mrb[0].mxu0 }
  0xe6   : > { %v352_v30 = vadd.f32 %v706_v29, %v640_v28  ;;  %v346_v31 = vpop.f32.mrb[1].mxu0 }
  0xe7   : > { %v347_v32 = vadd.f32 %v640_v28, %v346_v31 }
  0xe8   : > { %v396_v35 = vmax.f32 %v352_v30, 0.0 }
  0xe9   : > { %v395_v33 = vmax.f32 %v347_v32, 0.0  ;;  %v709_v34 = vpop.f32.mrb[2].mxu0 }
  0xea   : > { %v362_v36 = vadd.f32 %v709_v34, %v640_v28  ;;  %v356_v37 = vpop.f32.mrb[3].mxu0 }
  0xeb   : > { %v357_v38 = vadd.f32 %v640_v28, %v356_v37  ;;  %735 = vmatprep.mubr.msk.f32.mxu0 %vm420_vm1, %v395_v33 }
  0xec   : > { %736 = vmatmul.mubr.msk.f32.vlgmr.msra.gmra.mrb[10].mxu0 %vm420_vm1, %v396_v35  ;;  %v398_v41 = vmax.f32 %v362_v36, 0.0 }
  0xed   : > { %v397_v39 = vmax.f32 %v357_v38, 0.0  ;;  %v712_v40 = vpop.f32.mrb[4].mxu0 }
  0xee   : > { %v372_v42 = vadd.f32 %v712_v40, %v640_v28  ;;  %v366_v43 = vpop.f32.mrb[5].mxu0 }
  0xef   : > { %v367_v44 = vadd.f32 %v640_v28, %v366_v43  ;;  %738 = vmatprep.mubr.msk.f32.mxu1 %vm420_vm1, %v397_v39 }
  0xf0   : > { %739 = vmatmul.mubr.msk.f32.vlgmr.msra.gmra.mrb[0].mxu1 %vm420_vm1, %v398_v41  ;;  %v400_v47 = vmax.f32 %v372_v42, 0.0 }
  0xf1   : > { %v399_v45 = vmax.f32 %v367_v44, 0.0  ;;  %v715_v46 = vpop.f32.mrb[6].mxu0 }
  0xf2   : > { %v382_v48 = vadd.f32 %v715_v46, %v640_v28  ;;  %v376_v49 = vpop.f32.mrb[7].mxu0 }
  0xf3   : > { %v377_v50 = vadd.f32 %v640_v28, %v376_v49  ;;  %741 = vmatprep.mubr.msk.f32.mxu1 %vm420_vm1, %v399_v45 }
  0xf4   : > { %742 = vmatmul.mubr.msk.f32.gmra.mrb[2].mxu1 %vm420_vm1, %v400_v47  ;;  %v402_v53 = vmax.f32 %v382_v48, 0.0 }
  0xf5   : > { %v401_v51 = vmax.f32 %v377_v50, 0.0  ;;  %v718_v52 = vpop.f32.mrb[8].mxu0 }
  0xf6   : > { %v392_v54 = vadd.f32 %v718_v52, %v640_v28  ;;  %v386_v55 = vpop.f32.mrb[9].mxu0 }
  0xf7   : > { %v387_v56 = vadd.f32 %v640_v28, %v386_v55  ;;  %744 = vmatprep.mubr.msk.f32.mxu1 %vm420_vm1, %v401_v51 }
  0xf8   : > { %745 = vmatmul.mubr.msk.f32.gmra.mrb[4].mxu1 %vm420_vm1, %v402_v53  ;;  %v404_v58 = vmax.f32 %v392_v54, 0.0 }
  0xf9   : > { %v403_v57 = vmax.f32 %v387_v56, 0.0 }
  0xfb   : > { %747 = vmatprep.mubr.msk.f32.mxu1 %vm420_vm1, %v403_v57 }
  0xfc   : > { %748 = vmatmul.mubr.msk.f32.gmra.mrb[6].mxu1 %vm420_vm1, %v404_v58 }
 0x1bf   : > { %v737_v60 = vpop.f32.mrb[10].mxu0 }
 0x1c0   : > { %v523_v61 = vadd.f32 %v737_v60, %v651_v59  ;;  %v517_v62 = vpop.f32.mrb[11].mxu0 }
 0x1c1   : > { %v518_v63 = vadd.f32 %v651_v59, %v517_v62 }
 0x1c2   : > { %568 = vst.msk [vmem:[%s911_s7 + $0x8] sm:$0xff] %vm566_vm2, %v523_v61 }
 0x1c3   : > { %567 = vst.msk [vmem:[%s911_s7] sm:$0xff] %vm566_vm2, %v518_v63  ;;  %v740_v0 = vpop.f32.mrb[0].mxu1 }
 0x1c4   : > { %v533_v1 = vadd.f32 %v740_v0, %v651_v59  ;;  %v527_v2 = vpop.f32.mrb[1].mxu1 }
 0x1c5   : > { %v528_v3 = vadd.f32 %v651_v59, %v527_v2 }
 0x1c6   : > { %570 = vst.msk [vmem:[%s911_s7 + $0x18] sm:$0xff] %vm566_vm2, %v533_v1 }
 0x1c7   : > { %569 = vst.msk [vmem:[%s911_s7 + $0x10] sm:$0xff] %vm566_vm2, %v528_v3  ;;  %v743_v4 = vpop.f32.mrb[2].mxu1 }
 0x1c8   : > { %v543_v5 = vadd.f32 %v743_v4, %v651_v59  ;;  %v537_v6 = vpop.f32.mrb[3].mxu1 }
 0x1c9   : > { %v538_v7 = vadd.f32 %v651_v59, %v537_v6 }
 0x1ca   : > { %572 = vst.msk [vmem:[%s911_s7 + $0x28] sm:$0xff] %vm566_vm2, %v543_v5 }
 0x1cb   : > { %571 = vst.msk [vmem:[%s911_s7 + $0x20] sm:$0xff] %vm566_vm2, %v538_v7  ;;  %v746_v8 = vpop.f32.mrb[4].mxu1 }
 0x1cc   : > { %v553_v9 = vadd.f32 %v746_v8, %v651_v59  ;;  %v547_v10 = vpop.f32.mrb[5].mxu1 }
 0x1cd   : > { %v548_v11 = vadd.f32 %v651_v59, %v547_v10 }
 0x1ce   : > { %574 = vst.msk [vmem:[%s911_s7 + $0x38] sm:$0xff] %vm566_vm2, %v553_v9 }
 0x1cf   : > { %573 = vst.msk [vmem:[%s911_s7 + $0x30] sm:$0xff] %vm566_vm2, %v548_v11  ;;  %v749_v12 = vpop.f32.mrb[6].mxu1 }
 0x1d0   : > { %v563_v13 = vadd.f32 %v749_v12, %v651_v59  ;;  %v557_v14 = vpop.f32.mrb[7].mxu1 }
 0x1d1   : > { %v558_v15 = vadd.f32 %v651_v59, %v557_v14 }
 0x1d2   : > { %576 = vst.msk [vmem:[%s911_s7 + $0x48] sm:$0xff] %vm566_vm2, %v563_v13 }
 0x1d3   : > { %575 = vst.msk [vmem:[%s911_s7 + $0x40] sm:$0xff] %vm566_vm2, %v558_v15 }
 0x1d4 PF: > { %s15_s18 = sadd.s32 1, %s796_s18  }
 0x1d5   : > { %p12_p4 = scmp.ge.s32.totalorder %s15_s18, 6  }
 0x1d7   :  { %14 = sbr.rel (!%p12_p4) target bundleno = 1 (0x1), region = 70 }

</bundles_post_ra>
